<compile_context>
chip_gen: v6e
topology: v6e:2x2x1
jax: 0.10.0
libtpu: 0.0.40
codegen_flags: <defaults>
</compile_context>

<pallas_src>
import functools

import jax
import jax.numpy as jnp
from jax.experimental import pallas as pl
from jax.experimental.pallas import tpu as pltpu

HIDDEN = 128
DROP_P = 0.2
LANES = 128


def _round_up(n, m):
    return ((n + m - 1) // m) * m


def _keep_mask(shape, seed, row_offset, keep_prob):
    """Stateless per-element Bernoulli(keep_prob) mask via an integer hash."""
    rows = jax.lax.broadcasted_iota(jnp.int32, shape, 0) + row_offset
    cols = jax.lax.broadcasted_iota(jnp.int32, shape, 1)
    idx = rows * jnp.int32(shape[1]) + cols
    h = idx.astype(jnp.uint32) + seed.astype(jnp.uint32) * jnp.uint32(0x9E3779B9)
    # murmur3 fmix32
    h = h ^ (h >> 16)
    h = h * jnp.uint32(0x85EBCA6B)
    h = h ^ (h >> 13)
    h = h * jnp.uint32(0xC2B2AE35)
    h = h ^ (h >> 16)
    bits24 = (h >> 8).astype(jnp.int32)              # uniform in [0, 2^24)
    threshold = jnp.int32(int(keep_prob * float(1 << 24)))
    return bits24 < threshold


def _qnet_kernel(seed_ref, x_ref, w1_ref, b1_ref, w2_ref, b2_ref, w3_ref,
                 b3_ref, o_ref, *, training: bool, drop_p: float, tile_b: int):
    w_dtype = w1_ref.dtype                            # f32 or bf16 storage
    x = x_ref[...].astype(w_dtype)

    # fc1 + relu (MXU matmul, f32 accumulation)
    h = jnp.dot(x, w1_ref[...], preferred_element_type=jnp.float32)
    h = jnp.maximum(h + b1_ref[...].astype(jnp.float32), 0.0)

    # fc2 + relu
    h = jnp.dot(h.astype(w_dtype), w2_ref[...], preferred_element_type=jnp.float32)
    h = jnp.maximum(h + b2_ref[...].astype(jnp.float32), 0.0)

    # dropout(p): identity in eval mode, inverted-scaled mask in train mode.
    if training:
        keep_prob = 1.0 - drop_p
        row_offset = pl.program_id(0) * tile_b        # decorrelate batch tiles
        keep = _keep_mask(h.shape, seed_ref[0], row_offset, keep_prob)
        h = jnp.where(keep, h * jnp.float32(1.0 / keep_prob), jnp.float32(0.0))

    # fc3 (no activation); output lanes are padded to a multiple of 128.
    out = jnp.dot(h.astype(w_dtype), w3_ref[...], preferred_element_type=jnp.float32)
    o_ref[...] = (out + b3_ref[...].astype(jnp.float32)).astype(o_ref.dtype)


def qnetwork_dropout_forward(x, params, *, training: bool = False, seed=0,
                             tile_b: int = 256):
    """Fused forward pass of QNetwork_Dropout.

    x: (batch, state_dim) float32
    params: w1 (state_dim,128), b1 (1,128), w2 (128,128), b2 (1,128),
            w3 (128,action_dim), b3 (1,action_dim). Weights may be bf16.
    seed: runtime scalar (int or jnp int32) used only when training=True.
    """
    batch, state_dim = x.shape
    action_dim = params["w3"].shape[1]

    # Lane-pad the output head to a multiple of 128 (full-width stores).
    out_pad = _round_up(action_dim, LANES)
    w3, b3 = params["w3"], params["b3"]
    if out_pad != action_dim:
        w3 = jnp.pad(w3, ((0, 0), (0, out_pad - action_dim)))
        b3 = jnp.pad(b3, ((0, 0), (0, out_pad - action_dim)))

    # Batch tiling: multiple of 8 sublanes, capped at tile_b (VMEM-safe on
    # v7x's 64 MiB as well as v5e/v6e's 128 MiB).
    tile = _round_up(min(tile_b, _round_up(batch, 8)), 8)
    batch_p = _round_up(batch, tile)
    if batch_p != batch:
        x = jnp.pad(x, ((0, batch_p - batch), (0, 0)))
    grid = (batch_p // tile,)

    seed_arr = jnp.asarray(seed, dtype=jnp.int32).reshape((1,))

    kernel = functools.partial(_qnet_kernel, training=training,
                               drop_p=DROP_P, tile_b=tile)

    w_bytes = sum(int(a.size) * a.dtype.itemsize
                  for a in (params["w1"], params["b1"], params["w2"],
                            params["b2"], w3, b3))
    cost = pl.CostEstimate(
        flops=2 * batch_p * (state_dim * HIDDEN + HIDDEN * HIDDEN + HIDDEN * out_pad),
        transcendentals=0,
        bytes_accessed=int(x.size) * x.dtype.itemsize
                       + batch_p * out_pad * 4 + w_bytes,
    )

    grid_spec = pltpu.PrefetchScalarGridSpec(
        num_scalar_prefetch=1,
        grid=grid,
        in_specs=[
            pl.BlockSpec((tile, state_dim), lambda i, s: (i, 0)),    # x (streamed)
            pl.BlockSpec((state_dim, HIDDEN), lambda i, s: (0, 0)),  # w1 (resident)
            pl.BlockSpec((1, HIDDEN), lambda i, s: (0, 0)),          # b1
            pl.BlockSpec((HIDDEN, HIDDEN), lambda i, s: (0, 0)),     # w2
            pl.BlockSpec((1, HIDDEN), lambda i, s: (0, 0)),          # b2
            pl.BlockSpec((HIDDEN, out_pad), lambda i, s: (0, 0)),    # w3 (padded)
            pl.BlockSpec((1, out_pad), lambda i, s: (0, 0)),         # b3 (padded)
        ],
        out_specs=pl.BlockSpec((tile, out_pad), lambda i, s: (i, 0)),
    )

    out = pl.pallas_call(
        kernel,
        out_shape=jax.ShapeDtypeStruct((batch_p, out_pad), jnp.float32),
        grid_spec=grid_spec,
        compiler_params=pltpu.CompilerParams(
            dimension_semantics=("parallel",)),
        cost_estimate=cost,
    )(seed_arr, x, params["w1"], params["b1"], params["w2"], params["b2"],
      w3, b3)

    return out[:batch, :action_dim]


def init_params(key, state_dim, action_dim, param_dtype=jnp.float32):
    """Deterministic init mimicking nn.Linear's uniform(-1/sqrt(fan_in), +)."""
    def linear(key, fan_in, fan_out):
        kw, kb = jax.random.split(key)
        bound = 1.0 / jnp.sqrt(jnp.float32(fan_in))
        w = jax.random.uniform(kw, (fan_in, fan_out), jnp.float32, -bound, bound)
        b = jax.random.uniform(kb, (1, fan_out), jnp.float32, -bound, bound)
        return w.astype(param_dtype), b

    k1, k2, k3 = jax.random.split(key, 3)
    w1, b1 = linear(k1, state_dim, HIDDEN)
    w2, b2 = linear(k2, HIDDEN, HIDDEN)
    w3, b3 = linear(k3, HIDDEN, action_dim)
    return {"w1": w1, "b1": b1, "w2": w2, "b2": b2, "w3": w3, "b3": b3}


def reference_forward(x, params):
    """Pure-JAX eval-mode (dropout = identity) f32 reference."""
    h = jax.nn.relu(x @ params["w1"] + params["b1"])
    h = jax.nn.relu(h @ params["w2"] + params["b2"])
    return h @ params["w3"] + params["b3"]


if __name__ == "__main__":
    key = jax.random.PRNGKey(0)
    state_dim, action_dim, batch = 16, 4, 8

    kx, kp = jax.random.split(key)
    x = jax.random.normal(kx, (batch, state_dim), jnp.float32)
    params = init_params(kp, state_dim, action_dim)

    # Eval mode (dropout = identity), matching module.eval() semantics.
    out = jax.block_until_ready(qnetwork_dropout_forward(x, params, training=False))
    ref = reference_forward(x, params)
    assert out.shape == (batch, action_dim)
    assert jnp.allclose(out, ref, atol=1e-5, rtol=1e-5), "mismatch vs f32 reference"

    # Train mode (stochastic inverted dropout); seed is a runtime scalar.
    out_train = jax.block_until_ready(
        qnetwork_dropout_forward(x, params, training=True, seed=1234))
    assert out_train.shape == (batch, action_dim)
    assert bool(jnp.all(jnp.isfinite(out_train)))

    # bf16 weight storage (f32 accumulation) -- the v6e/v7x bandwidth path.
    params_bf16 = {k: (v.astype(jnp.bfloat16) if k.startswith("w") else v)
                   for k, v in params.items()}
    out_bf16 = jax.block_until_ready(
        qnetwork_dropout_forward(x, params_bf16, training=False))
    assert out_bf16.shape == (batch, action_dim)
    assert jnp.allclose(out_bf16, ref, atol=0.1, rtol=0.1), "bf16 path mismatch"

    print("KERNEL_OK")
</pallas_src>

<mosaic_0001>
module attributes {stable_mosaic.version = 11 : i64} {
  func.func @_qnet_kernel(%arg0: i32, %arg1: memref<1xi32, #tpu.memory_space<smem>>, %arg2: memref<8x16xf32, #tpu.memory_space<vmem>>, %arg3: memref<16x128xf32, #tpu.memory_space<vmem>>, %arg4: memref<1x128xf32, #tpu.memory_space<vmem>>, %arg5: memref<128x128xf32, #tpu.memory_space<vmem>>, %arg6: memref<1x128xf32, #tpu.memory_space<vmem>>, %arg7: memref<128x128xf32, #tpu.memory_space<vmem>>, %arg8: memref<1x128xf32, #tpu.memory_space<vmem>>, %arg9: memref<8x128xf32, #tpu.memory_space<vmem>>) attributes {dimension_semantics = [#tpu.dimension_semantics<parallel>], iteration_bounds = array<i64: 1>, scalar_prefetch = 1 : i64, scratch_operands = 0 : i64, tpu.core_type = #tpu.core_type<tc>, window_params = [{transform_indices = @transform_0, window_bounds = array<i64: 8, 16>}, {pipeline_mode = #tpu.pipeline_mode<synchronous>, transform_indices = @transform_1, window_bounds = array<i64: 16, 128>}, {pipeline_mode = #tpu.pipeline_mode<synchronous>, transform_indices = @transform_2, window_bounds = array<i64: 1, 128>}, {pipeline_mode = #tpu.pipeline_mode<synchronous>, transform_indices = @transform_3, window_bounds = array<i64: 128, 128>}, {pipeline_mode = #tpu.pipeline_mode<synchronous>, transform_indices = @transform_4, window_bounds = array<i64: 1, 128>}, {pipeline_mode = #tpu.pipeline_mode<synchronous>, transform_indices = @transform_5, window_bounds = array<i64: 128, 128>}, {pipeline_mode = #tpu.pipeline_mode<synchronous>, transform_indices = @transform_6, window_bounds = array<i64: 1, 128>}, {transform_indices = @transform_7, window_bounds = array<i64: 8, 128>}]} {
    %c0 = arith.constant 0 : index
    %c0_0 = arith.constant 0 : index
    %0 = vector.load %arg2[%c0, %c0_0] : memref<8x16xf32, #tpu.memory_space<vmem>>, vector<8x16xf32>
    %c0_1 = arith.constant 0 : index
    %c0_2 = arith.constant 0 : index
    %1 = vector.load %arg3[%c0_1, %c0_2] : memref<16x128xf32, #tpu.memory_space<vmem>>, vector<16x128xf32>
    %cst = arith.constant dense<0.000000e+00> : vector<8x128xf32>
    %2 = tpu.matmul %0, %1, %cst {dimension_numbers = #tpu.dot_dimension_numbers<[1], [0], [0], [1], [0, 0, 1, 1], [], []>} : vector<8x16xf32>, vector<16x128xf32>, vector<8x128xf32> -> vector<8x128xf32>
    %c0_3 = arith.constant 0 : index
    %c0_4 = arith.constant 0 : index
    %3 = vector.load %arg4[%c0_3, %c0_4] : memref<1x128xf32, #tpu.memory_space<vmem>>, vector<1x128xf32>
    %4 = vector.broadcast %3 : vector<1x128xf32> to vector<8x128xf32>
    %5 = arith.addf %2, %4 : vector<8x128xf32>
    %cst_5 = arith.constant 0.000000e+00 : f32
    %6 = vector.broadcast %cst_5 : f32 to vector<8x128xf32>
    %7 = arith.maximumf %5, %6 : vector<8x128xf32>
    %c0_6 = arith.constant 0 : index
    %c0_7 = arith.constant 0 : index
    %8 = vector.load %arg5[%c0_6, %c0_7] : memref<128x128xf32, #tpu.memory_space<vmem>>, vector<128x128xf32>
    %cst_8 = arith.constant dense<0.000000e+00> : vector<8x128xf32>
    %9 = tpu.matmul %7, %8, %cst_8 {dimension_numbers = #tpu.dot_dimension_numbers<[1], [0], [0], [1], [0, 0, 1, 1], [], []>} : vector<8x128xf32>, vector<128x128xf32>, vector<8x128xf32> -> vector<8x128xf32>
    %c0_9 = arith.constant 0 : index
    %c0_10 = arith.constant 0 : index
    %10 = vector.load %arg6[%c0_9, %c0_10] : memref<1x128xf32, #tpu.memory_space<vmem>>, vector<1x128xf32>
    %11 = vector.broadcast %10 : vector<1x128xf32> to vector<8x128xf32>
    %12 = arith.addf %9, %11 : vector<8x128xf32>
    %cst_11 = arith.constant 0.000000e+00 : f32
    %13 = vector.broadcast %cst_11 : f32 to vector<8x128xf32>
    %14 = arith.maximumf %12, %13 : vector<8x128xf32>
    %c0_12 = arith.constant 0 : index
    %c0_13 = arith.constant 0 : index
    %15 = vector.load %arg7[%c0_12, %c0_13] : memref<128x128xf32, #tpu.memory_space<vmem>>, vector<128x128xf32>
    %cst_14 = arith.constant dense<0.000000e+00> : vector<8x128xf32>
    %16 = tpu.matmul %14, %15, %cst_14 {dimension_numbers = #tpu.dot_dimension_numbers<[1], [0], [0], [1], [0, 0, 1, 1], [], []>} : vector<8x128xf32>, vector<128x128xf32>, vector<8x128xf32> -> vector<8x128xf32>
    %c0_15 = arith.constant 0 : index
    %c0_16 = arith.constant 0 : index
    %17 = vector.load %arg8[%c0_15, %c0_16] : memref<1x128xf32, #tpu.memory_space<vmem>>, vector<1x128xf32>
    %18 = vector.broadcast %17 : vector<1x128xf32> to vector<8x128xf32>
    %19 = arith.addf %16, %18 : vector<8x128xf32>
    %c0_17 = arith.constant 0 : index
    %c0_18 = arith.constant 0 : index
    %20 = vector.load %arg9[%c0_17, %c0_18] : memref<8x128xf32, #tpu.memory_space<vmem>>, vector<8x128xf32>
    tpu.vector_store %arg9[%c0_17, %c0_18], %19 {strides = array<i32>} : memref<8x128xf32, #tpu.memory_space<vmem>>, vector<8x128xf32>,
    return
  }
  func.func @transform_0(%arg0: i32, %arg1: memref<1xi32, #tpu.memory_space<smem>>) -> (i32, i32) {
    %c0_i32 = arith.constant 0 : i32
    %c0_i32_0 = arith.constant 0 : i32
    return %arg0, %c0_i32 : i32, i32
  }
  func.func @transform_1(%arg0: i32, %arg1: memref<1xi32, #tpu.memory_space<smem>>) -> (i32, i32) {
    %c0_i32 = arith.constant 0 : i32
    %c0_i32_0 = arith.constant 0 : i32
    %c0_i32_1 = arith.constant 0 : i32
    return %c0_i32, %c0_i32_0 : i32, i32
  }
  func.func @transform_2(%arg0: i32, %arg1: memref<1xi32, #tpu.memory_space<smem>>) -> (i32, i32) {
    %c0_i32 = arith.constant 0 : i32
    %c0_i32_0 = arith.constant 0 : i32
    %c0_i32_1 = arith.constant 0 : i32
    return %c0_i32, %c0_i32_0 : i32, i32
  }
  func.func @transform_3(%arg0: i32, %arg1: memref<1xi32, #tpu.memory_space<smem>>) -> (i32, i32) {
    %c0_i32 = arith.constant 0 : i32
    %c0_i32_0 = arith.constant 0 : i32
    %c0_i32_1 = arith.constant 0 : i32
    return %c0_i32, %c0_i32_0 : i32, i32
  }
  func.func @transform_4(%arg0: i32, %arg1: memref<1xi32, #tpu.memory_space<smem>>) -> (i32, i32) {
    %c0_i32 = arith.constant 0 : i32
    %c0_i32_0 = arith.constant 0 : i32
    %c0_i32_1 = arith.constant 0 : i32
    return %c0_i32, %c0_i32_0 : i32, i32
  }
  func.func @transform_5(%arg0: i32, %arg1: memref<1xi32, #tpu.memory_space<smem>>) -> (i32, i32) {
    %c0_i32 = arith.constant 0 : i32
    %c0_i32_0 = arith.constant 0 : i32
    %c0_i32_1 = arith.constant 0 : i32
    return %c0_i32, %c0_i32_0 : i32, i32
  }
  func.func @transform_6(%arg0: i32, %arg1: memref<1xi32, #tpu.memory_space<smem>>) -> (i32, i32) {
    %c0_i32 = arith.constant 0 : i32
    %c0_i32_0 = arith.constant 0 : i32
    %c0_i32_1 = arith.constant 0 : i32
    return %c0_i32, %c0_i32_0 : i32, i32
  }
  func.func @transform_7(%arg0: i32, %arg1: memref<1xi32, #tpu.memory_space<smem>>) -> (i32, i32) {
    %c0_i32 = arith.constant 0 : i32
    %c0_i32_0 = arith.constant 0 : i32
    return %arg0, %c0_i32 : i32, i32
  }
}

</mosaic_0001>

<bundles_post_ra>
// kernel: tpu_custom_call.1
= control target key start
LH: loop header
LB: loop body
LE: loop exit
PB: predicated region body
PF: predicated region fallthrough
CT: control target
= control target key end

     0   :  { %14 = vsyncpa [#allocation5], 0  ;;  %s734_s0 = inlined_call_operand.<no memory space> [shape: s32[1], index: 0, kind: input, shape index: {}]   ;;  %s735_s1 = inlined_call_operand.hbm [shape: f32[8,16], index: 1, kind: input, shape index: {}]   ;;  %s736_s2 = inlined_call_operand.hbm [shape: f32[16,128], index: 2, kind: input, shape index: {}]   ;;  %s737_s3 = inlined_call_operand.vmem [shape: f32[1,128], index: 3, kind: input, shape index: {}]   ;;  %s738_s4 = inlined_call_operand.hbm [shape: f32[128,128], index: 4, kind: input, shape index: {}]   ;;  %s739_s5 = inlined_call_operand.vmem [shape: f32[1,128], index: 5, kind: input, shape index: {}]   ;;  %s740_s6 = inlined_call_operand.hbm [shape: f32[128,128], index: 6, kind: input, shape index: {}]   ;;  %s741_s7 = inlined_call_operand.vmem [shape: f32[1,128], index: 7, kind: input, shape index: {}]   ;;  %s742_s8 = inlined_call_operand.hbm [shape: f32[8,128], index: 8, kind: output, shape index: {}]  }
   0x1   :  { %15 = vsyncpa [#allocation8], 0 }
   0x2   :  { %16 = vsyncpa [#allocation11], 0 }
   0x3   :  { %17 = vsyncpa [#allocation6], 0  ;;  %s607_s26 = smov [#allocation7]  }
   0x4   :  { %s33_s27 = sshll.u32 %s607_s26, 4  ;;  %s34_s27 = int_to_ptr.vmem [resolvable:$true] %s33_s27 }
   0x5   :  { %s507_s28 = scalar_lea.vmem %s34_s27, 256  ;;  %p512_p1 = scmp.lt.s32.totalorder %s34_s27, %s34_s27 }
   0x6   :  { %p508_p0 = scmp.ne.s32.totalorder %s34_s27, %s507_s28  ;;  %p513_p2 = scmp.lt.s32.totalorder %s507_s28, %s507_s28 }
   0x8   :  { %p514_p3 = por %p513_p2, %p512_p1 }
   0xa   :  { %p515_p4 = pnand %p514_p3, %p508_p0 }
   0xc   :  { %518 = shalt.err (!%p515_p4)
}
   0xd   :  { %s608_s29 = smov 128   ;;  %s609_s30 = smov 8  }
   0xe   :  { %39 = dma.hbm_to_vmem [thread:$0]  %s736_s2, 256, %s34_s27, [#allocation8], %s608_s29, %s608_s29, %s609_s30  }
   0xf   :  { %s610_s11 = smov [#allocation4]   ;;  %s611_s13 = smov [#allocation9]  }
  0x10   :  { %s24_s12 = sshll.u32 %s610_s11, 4  ;;  %s47_s14 = sshll.u32 %s611_s13, 4  ;;  %s25_s12 = int_to_ptr.vmem [resolvable:$true] %s24_s12  ;;  %s48_s14 = int_to_ptr.vmem [resolvable:$true] %s47_s14 }
  0x11   :  { %s527_s15 = scalar_lea.vmem %s25_s12, 128  ;;  %p532_p6 = scmp.lt.s32.totalorder %s25_s12, %s25_s12 }
  0x12   :  { %p528_p5 = scmp.ne.s32.totalorder %s25_s12, %s527_s15  ;;  %p533_p7 = scmp.lt.s32.totalorder %s527_s15, %s527_s15 }
  0x14   :  { %p534_p8 = por %p533_p7, %p532_p6 }
  0x16   :  { %p535_p9 = pnand %p534_p8, %p528_p5 }
  0x18   :  { %538 = shalt.err (!%p535_p9)
}
  0x19   :  { %27 = dma.hbm_to_vmem [thread:$0]  %s735_s1, 128, %s25_s12, [#allocation5]  }
  0x1a   :  { %s547_s18 = scalar_lea.vmem %s48_s14, 2048  ;;  %p552_p11 = scmp.lt.s32.totalorder %s48_s14, %s48_s14 }
  0x1b   :  { %p548_p10 = scmp.ne.s32.totalorder %s48_s14, %s547_s18  ;;  %p553_p12 = scmp.lt.s32.totalorder %s547_s18, %s547_s18 }
  0x1d   :  { %p554_p13 = por %p553_p12, %p552_p11 }
  0x1f   :  { %p555_p0 = pnand %p554_p13, %p548_p10 }
  0x21   :  { %558 = shalt.err (!%p555_p0)
}
  0x22   :  { %53 = dma.hbm_to_vmem [thread:$0]  %s738_s4, 2048, %s48_s14, [#allocation8], %s608_s29, %s608_s29, %s609_s30  }
  0x23   :  { %s612_s20 = smov [#allocation10]  }
  0x24   :  { %s61_s21 = sshll.u32 %s612_s20, 4  ;;  %s62_s21 = int_to_ptr.vmem [resolvable:$true] %s61_s21 }
  0x25   :  { %s567_s22 = scalar_lea.vmem %s62_s21, 2048  ;;  %p572_p2 = scmp.lt.s32.totalorder %s62_s21, %s62_s21 }
  0x26   :  { %p568_p1 = scmp.ne.s32.totalorder %s62_s21, %s567_s22  ;;  %p573_p3 = scmp.lt.s32.totalorder %s567_s22, %s567_s22 }
  0x28   :  { %p574_p4 = por %p573_p3, %p572_p2 }
  0x2a   :  { %p575_p5 = pnand %p574_p4, %p568_p1 }
  0x2c   :  { %578 = shalt.err (!%p575_p5)
}
  0x2d   :  { %67 = dma.hbm_to_vmem [thread:$0]  %s740_s6, 2048, %s62_s21, [#allocation11], %s608_s29, %s608_s29, %s609_s30  }
  0x2e   :  { %599 = dma.done.wait [#allocation5], 128  }
  0x2f   :  { %600 = vsyncadd [#allocation5], 4294967168 }
  0x30   :  { %601 = dma.done.wait [#allocation8], 2304  }
  0x31   :  { %602 = vsyncadd [#allocation8], 4294964992 }
  0x32   :  { %603 = dma.done.wait [#allocation11], 2048  }
  0x33   :  { %604 = vsyncadd [#allocation11], 4294965248  ;;  %v613_v0 = vmov 0.0   ;;  %vm614_vm0 = vmmov 0   ;;  %v84_v1 = vld [vmem:[#allocation7 + $0x8] sm:$0xff]  ;;  %v83_v2 = vld [vmem:[#allocation7] sm:$0xff] }
  0x34   :  { %413 = vmatprep.subr.mxu0 %v613_v0  ;;  %417 = vmatprep.mubr.msk.f32.mxu0 %vm614_vm0, %v613_v0  ;;  %v82_v3 = vld [vmem:[#allocation4] sm:$0xff]  ;;  %vm92_vm1 = vcmask 130048   ;;  %v182_v4 = vld [vmem:[#allocation9 + $0x78] sm:$0xff]  ;;  %v181_v5 = vld [vmem:[#allocation9 + $0x70] sm:$0xff]  ;;  %s615_s26 = smov [#allocation12]  }
  0x35   :  { %420 = vmatprep.subr.mxu1 %v613_v0  ;;  %452 = vmatprep.mubr.msk.f32.mxu1 %vm614_vm0, %v613_v0  ;;  %v180_v6 = vld [vmem:[#allocation9 + $0x68] sm:$0xff]  ;;  %v179_v7 = vld [vmem:[#allocation9 + $0x60] sm:$0xff]  ;;  %v178_v8 = vld [vmem:[#allocation9 + $0x58] sm:$0xff]  ;;  %s361_s27 = sshll.u32 %s615_s26, 4  ;;  %s362_s27 = int_to_ptr.vmem [resolvable:$true] %s361_s27 }
  0x36   :  { %414 = vmatpush3.msra.mxu0 %v84_v1  ;;  %421 = vmatpush3.msra.mxu1 %v182_v4  ;;  %v177_v9 = vld [vmem:[#allocation9 + $0x50] sm:$0xff]  ;;  %v176_v10 = vld [vmem:[#allocation9 + $0x48] sm:$0xff]  ;;  %v175_v11 = vld [vmem:[#allocation9 + $0x40] sm:$0xff]  ;;  %s579_s28 = scalar_lea.vmem %s362_s27, 128  ;;  %p584_p7 = scmp.lt.s32.totalorder %s362_s27, %s362_s27 }
  0x37   :  { %415 = vmatprep.subr.mxu0 %v613_v0  ;;  %422 = vmatprep.subr.mxu1 %v613_v0  ;;  %v174_v12 = vld [vmem:[#allocation9 + $0x38] sm:$0xff]  ;;  %v173_v13 = vld [vmem:[#allocation9 + $0x30] sm:$0xff]  ;;  %v172_v14 = vld [vmem:[#allocation9 + $0x28] sm:$0xff]  ;;  %p580_p6 = scmp.ne.s32.totalorder %s362_s27, %s579_s28  ;;  %p585_p8 = scmp.lt.s32.totalorder %s579_s28, %s579_s28 }
  0x38   :  { %416 = vmatpush3.msra.mxu0 %v83_v2  ;;  %423 = vmatpush3.msra.mxu1 %v181_v5  ;;  %v171_v15 = vld [vmem:[#allocation9 + $0x20] sm:$0xff]  ;;  %v170_v16 = vld [vmem:[#allocation9 + $0x18] sm:$0xff]  ;;  %v169_v17 = vld [vmem:[#allocation9 + $0x10] sm:$0xff] }
  0x39   :  { %418 = vmatmul.mubr.msk.f32.vlgmr.msra.gmra.mxu0 %vm92_vm1, %v82_v3  ;;  %424 = vmatprep.subr.mxu1 %v613_v0  ;;  %v168_v18 = vld [vmem:[#allocation9 + $0x8] sm:$0xff]  ;;  %v167_v19 = vld [vmem:[#allocation9] sm:$0xff]  ;;  %v276_v20 = vld [vmem:[#allocation10 + $0x78] sm:$0xff]  ;;  %p586_p9 = por %p585_p8, %p584_p7 }
  0x3a   :  { %455 = vmatprep.subr.mxu0 %v613_v0  ;;  %425 = vmatpush3.msra.mxu1 %v180_v6  ;;  %v275_v21 = vld [vmem:[#allocation10 + $0x70] sm:$0xff]  ;;  %v274_v22 = vld [vmem:[#allocation10 + $0x68] sm:$0xff]  ;;  %v273_v23 = vld [vmem:[#allocation10 + $0x60] sm:$0xff] }
  0x3b   :  { %487 = vmatprep.mubr.msk.f32.mxu0 %vm614_vm0, %v613_v0  ;;  %426 = vmatprep.subr.mxu1 %v613_v0  ;;  %v272_v24 = vld [vmem:[#allocation10 + $0x58] sm:$0xff]  ;;  %v271_v25 = vld [vmem:[#allocation10 + $0x50] sm:$0xff]  ;;  %v270_v26 = vld [vmem:[#allocation10 + $0x48] sm:$0xff]  ;;  %p587_p10 = pnand %p586_p9, %p580_p6 }
  0x3c   :  { %427 = vmatpush3.msra.mxu1 %v179_v7  ;;  %456 = vmatpush3.msra.mxu0 %v276_v20  ;;  %v269_v27 = vld [vmem:[#allocation10 + $0x40] sm:$0xff]  ;;  %v268_v28 = vld [vmem:[#allocation10 + $0x38] sm:$0xff]  ;;  %v267_v29 = vld [vmem:[#allocation10 + $0x30] sm:$0xff] }
  0x3d   :  { %428 = vmatprep.subr.mxu1 %v613_v0  ;;  %457 = vmatprep.subr.mxu0 %v613_v0  ;;  %v266_v30 = vld [vmem:[#allocation10 + $0x28] sm:$0xff]  ;;  %v265_v31 = vld [vmem:[#allocation10 + $0x20] sm:$0xff]  ;;  %v264_v32 = vld [vmem:[#allocation10 + $0x18] sm:$0xff] }
  0x3e   :  { %429 = vmatpush3.msra.mxu1 %v178_v8  ;;  %458 = vmatpush3.msra.mxu0 %v275_v21  ;;  %v372_v33 = vld [vmem:[%s737_s3] ss:$0 sm:$0xff]  ;;  %v263_v38 = vld [vmem:[#allocation10 + $0x10] sm:$0xff]  ;;  %v261_v40 = vld [vmem:[#allocation10] sm:$0xff] }
  0x3f   :  { %430 = vmatprep.subr.mxu1 %v613_v0  ;;  %459 = vmatprep.subr.mxu0 %v613_v0  ;;  %v262_v39 = vld [vmem:[#allocation10 + $0x8] sm:$0xff] }
  0x40   :  { %431 = vmatpush3.msra.mxu1 %v177_v9  ;;  %460 = vmatpush3.msra.mxu0 %v274_v22  ;;  %v374_v41 = vld [vmem:[%s739_s5] ss:$0 sm:$0xff] }
  0x41   :  { %432 = vmatprep.subr.mxu1 %v613_v0  ;;  %461 = vmatprep.subr.mxu0 %v613_v0  ;;  %v375_v46 = vld [vmem:[%s741_s7] ss:$0 sm:$0xff] }
  0x42   :  { %433 = vmatpush3.msra.mxu1 %v176_v10  ;;  %462 = vmatpush3.msra.mxu0 %v273_v23 }
  0x43   :  { %434 = vmatprep.subr.mxu1 %v613_v0  ;;  %463 = vmatprep.subr.mxu0 %v613_v0 }
  0x44   :  { %435 = vmatpush3.msra.mxu1 %v175_v11  ;;  %464 = vmatpush3.msra.mxu0 %v272_v24 }
  0x45   :  { %436 = vmatprep.subr.mxu1 %v613_v0  ;;  %465 = vmatprep.subr.mxu0 %v613_v0 }
  0x46   :  { %437 = vmatpush3.msra.mxu1 %v174_v12  ;;  %466 = vmatpush3.msra.mxu0 %v271_v25 }
  0x47   :  { %438 = vmatprep.subr.mxu1 %v613_v0  ;;  %467 = vmatprep.subr.mxu0 %v613_v0 }
  0x48   :  { %439 = vmatpush3.msra.mxu1 %v173_v13  ;;  %468 = vmatpush3.msra.mxu0 %v270_v26 }
  0x49   :  { %440 = vmatprep.subr.mxu1 %v613_v0  ;;  %469 = vmatprep.subr.mxu0 %v613_v0 }
  0x4a   :  { %441 = vmatpush3.msra.mxu1 %v172_v14  ;;  %470 = vmatpush3.msra.mxu0 %v269_v27 }
  0x4b   :  { %442 = vmatprep.subr.mxu1 %v613_v0  ;;  %471 = vmatprep.subr.mxu0 %v613_v0 }
  0x4c   :  { %443 = vmatpush3.msra.mxu1 %v171_v15  ;;  %472 = vmatpush3.msra.mxu0 %v268_v28 }
  0x4d   :  { %444 = vmatprep.subr.mxu1 %v613_v0  ;;  %473 = vmatprep.subr.mxu0 %v613_v0 }
  0x4e   :  { %445 = vmatpush3.msra.mxu1 %v170_v16  ;;  %474 = vmatpush3.msra.mxu0 %v267_v29 }
  0x4f   :  { %446 = vmatprep.subr.mxu1 %v613_v0  ;;  %475 = vmatprep.subr.mxu0 %v613_v0 }
  0x50   :  { %447 = vmatpush3.msra.mxu1 %v169_v17  ;;  %476 = vmatpush3.msra.mxu0 %v266_v30 }
  0x51   :  { %448 = vmatprep.subr.mxu1 %v613_v0  ;;  %477 = vmatprep.subr.mxu0 %v613_v0 }
  0x52   :  { %449 = vmatpush3.msra.mxu1 %v168_v18  ;;  %478 = vmatpush3.msra.mxu0 %v265_v31 }
  0x53   :  { %450 = vmatprep.subr.mxu1 %v613_v0  ;;  %479 = vmatprep.subr.mxu0 %v613_v0 }
  0x54   :  { %451 = vmatpush3.msra.mxu1 %v167_v19  ;;  %480 = vmatpush3.msra.mxu0 %v264_v32 }
  0x55   :  { %481 = vmatprep.subr.mxu0 %v613_v0 }
  0x56   :  { %482 = vmatpush3.msra.mxu0 %v263_v38 }
  0x57   :  { %483 = vmatprep.subr.mxu0 %v613_v0 }
  0x58   :  { %484 = vmatpush3.msra.mxu0 %v262_v39 }
  0x59   :  { %485 = vmatprep.subr.mxu0 %v613_v0 }
  0x5a   :  { %486 = vmatpush3.msra.mxu0 %v261_v40 }
  0xf9   :  { %v162_v34 = vpop.f32.mrf.mxu0 }
  0xfa   :  { %v163_v35 = vadd.f32 %v372_v33, %v162_v34 }
  0xfb   :  { %v419_v36 = vpop.f32.mrf.mxu0 }
  0xfc   :  { %v166_v37 = vmax.f32 %v163_v35, 0.0 }
  0xfe   :  { %453 = vmatmul.mubr.f32.vlgmr.msra.gmra.mxu1 %v166_v37 }
 0x1be   :  { %v256_v42 = vpop.f32.mrf.mxu1 }
 0x1bf   :  { %v257_v43 = vadd.f32 %v374_v41, %v256_v42 }
 0x1c0   :  { %v454_v44 = vpop.f32.mrf.mxu1 }
 0x1c1   :  { %v260_v45 = vmax.f32 %v257_v43, 0.0 }
 0x1c3   :  { %488 = vmatmul.mubr.f32.vlgmr.msra.gmra.mxu0 %v260_v45 }
 0x283   :  { %v350_v47 = vpop.f32.mrf.mxu0 }
 0x284   :  { %v351_v48 = vadd.f32 %v375_v46, %v350_v47 }
 0x285   :  { %v489_v49 = vpop.f32.mrf.mxu0 }
 0x286   :  { %354 = vst [vmem:[#allocation12] sm:$0xff] %v351_v48 }
 0x287   :  { %590 = shalt.err (!%p587_p10)
}
 0x288   :  { %364 = dma.vmem_to_hbm [thread:$0]  %s362_s27, 128, %s742_s8, [#allocation6]  }
 0x289   :  { %605 = dma.done.wait [#allocation6], 128  }
 0x28a   :  { %606 = vsyncadd [#allocation6], 4294967168 }
 0x28b   :  { %368 = vsyncpa [#allocation5], 1 }
 0x28c   :  { %369 = vsyncpa [#allocation8], 1 }
 0x28d   :  { %370 = vsyncpa [#allocation11], 1 }
 0x28e   :  { %371 = vsyncpa [#allocation6], 1 }

</bundles_post_ra>
